<compile_context>
chip_gen: v7x
topology: tpu7x:2x2x1
jax: 0.10.0
libtpu: 0.0.40
codegen_flags: <defaults>
</compile_context>

<pallas_src>
import functools
import math

import jax
import jax.numpy as jnp
from jax import lax
from jax.experimental import pallas as pl
from jax.experimental.pallas import tpu as pltpu


# ---------------------------------------------------------------------------
# Kernels
# ---------------------------------------------------------------------------
def _silu_f32(g: jax.Array, approx: bool) -> jax.Array:
    """SiLU in f32; approx=True routes the reciprocal to the EUP slot."""
    if approx:
        return g * pl.reciprocal(1.0 + jnp.exp(-g), approx=True)
    return g * lax.logistic(g)


def _swiglu_split_kernel(a_ref, g_ref, o_ref, *, approx: bool):
    """Fast path: x-half and gates-half arrive as separate lane-aligned refs."""
    g = g_ref[...].astype(jnp.float32)
    a = a_ref[...].astype(jnp.float32)
    o_ref[...] = (_silu_f32(g, approx) * a).astype(o_ref.dtype)


def _swiglu_concat_kernel(x_ref, o_ref, *, d: int, approx: bool):
    """Fallback path: one full-width [tm, 2*d] block, split in-kernel."""
    blk = x_ref[...]
    a = blk[:, :d].astype(jnp.float32)
    g = blk[:, d:].astype(jnp.float32)
    o_ref[...] = (_silu_f32(g, approx) * a).astype(o_ref.dtype)


# ---------------------------------------------------------------------------
# Generation-gated VMEM policy
# ---------------------------------------------------------------------------
def _vmem_policy():
    """Return (per_buffer_budget_bytes, vmem_limit_bytes) gated on TPU generation."""
    try:
        cap = int(getattr(pltpu.get_tpu_info(), "vmem_capacity_bytes", 0))
    except Exception:
        cap = 0

    if cap and cap <= (64 << 20):
        # v7x: 64 MiB physical per TensorCore -> ~36 MiB total (6 buffers),
        # limit kept below ~48 MiB so Mosaic retains internal scratch.
        budget, limit = 6 << 20, 44 << 20
    elif cap:
        # v5e / v6e: 128 MiB physical (scoped defaults are only 16 / 32 MiB).
        budget, limit = 8 << 20, 64 << 20
    else:
        # Unknown generation: conservative sizes that compile everywhere.
        budget, limit = 4 << 20, 40 << 20

    if cap:
        limit = min(limit, max(32 << 20, cap - (16 << 20)))
    return budget, limit


# ---------------------------------------------------------------------------
# Tile selection
# ---------------------------------------------------------------------------
def _round_up(x: int, m: int) -> int:
    return ((x + m - 1) // m) * m


def _largest_aligned_divisor(d: int, itemsize: int, budget: int, sub: int) -> int:
    """Largest divisor of d that is a multiple of 128 and leaves room for >= sub rows."""
    m = d // 128
    divisors = set()
    i = 1
    while i * i <= m:
        if m % i == 0:
            divisors.add(i)
            divisors.add(m // i)
        i += 1
    for dv in sorted(divisors, reverse=True):
        td = 128 * dv
        if td * itemsize * sub <= budget:
            return td
    return 128


def _pick_tiles(rows: int, d: int, itemsize: int, budget: int):
    """Return (tm, td, split) sized against the per-buffer VMEM budget."""
    sub = max(8, 32 // itemsize)          # sublane packing: f32->8, bf16->16, i8/fp8->32

    if d % 128 == 0:
        split = True
        td = _largest_aligned_divisor(d, itemsize, budget, sub)
        width = td
    else:
        split = False
        td = d
        width = 2 * d

    tm = budget // max(1, width * itemsize)   # purely bytes-based (no row cap)
    tm = min(tm, _round_up(rows, sub))        # don't overshoot tiny inputs
    tm = max(sub, (tm // sub) * sub)          # keep dtype-native sublane alignment
    return tm, td, split


# ---------------------------------------------------------------------------
# Wrapper
# ---------------------------------------------------------------------------
def swiglu(x: jax.Array) -> jax.Array:
    """SwiGLU over the last axis (must be even): silu(gates) * x."""
    *lead, two_d = x.shape
    assert two_d % 2 == 0, "last dim must be even"
    d = two_d // 2

    rows = math.prod(lead) if lead else 1
    x2 = x.reshape(rows, two_d)
    itemsize = jnp.dtype(x.dtype).itemsize

    budget, vmem_limit = _vmem_policy()
    tm, td, split = _pick_tiles(rows, d, itemsize, budget)
    sub = max(8, 32 // itemsize)
    ncols = (d // td) if split else 1

    # Keep >= 2 blocks along a parallel axis when the data allows it: shards
    # work across both v7x TensorCores and enables DMA/compute overlap.
    if pl.cdiv(rows, tm) * ncols < 2 and rows >= 2 * sub:
        tm = max(sub, _round_up(pl.cdiv(rows, 2), sub))

    # Sub-32-bit inputs: approx EUP reciprocal is far below output precision.
    approx = itemsize < 4

    if split:
        gate_off = d // td
        out2 = pl.pallas_call(
            functools.partial(_swiglu_split_kernel, approx=approx),
            out_shape=jax.ShapeDtypeStruct((rows, d), x.dtype),
            grid_spec=pltpu.PrefetchScalarGridSpec(
                num_scalar_prefetch=0,
                grid=(pl.cdiv(rows, tm), d // td),
                in_specs=[
                    pl.BlockSpec((tm, td), lambda i, j: (i, j)),                    # x half
                    pl.BlockSpec((tm, td), lambda i, j, _o=gate_off: (i, j + _o)),  # gates half
                ],
                out_specs=pl.BlockSpec((tm, td), lambda i, j: (i, j)),
            ),
            compiler_params=pltpu.CompilerParams(
                dimension_semantics=("parallel", "parallel"),
                vmem_limit_bytes=vmem_limit,
            ),
        )(x2, x2)
    else:
        # Slow corner: d not a multiple of 128 -> unaligned in-kernel split and
        # (for d < 128) masked partial stores. Block stays full-width (equals
        # the array's last dim) so the BlockSpec is always legal.
        # TODO(synk): if non-128-multiple d becomes a hot shape, pad d to a
        # multiple of 128 around the pallas_call so it hits the split fast path.
        out2 = pl.pallas_call(
            functools.partial(_swiglu_concat_kernel, d=d, approx=approx),
            out_shape=jax.ShapeDtypeStruct((rows, d), x.dtype),
            grid_spec=pltpu.PrefetchScalarGridSpec(
                num_scalar_prefetch=0,
                grid=(pl.cdiv(rows, tm),),
                in_specs=[pl.BlockSpec((tm, two_d), lambda i: (i, 0))],
                out_specs=pl.BlockSpec((tm, d), lambda i: (i, 0)),
            ),
            compiler_params=pltpu.CompilerParams(
                dimension_semantics=("parallel",),
                vmem_limit_bytes=vmem_limit,
            ),
        )(x2)

    return out2.reshape(*lead, d)


# ---------------------------------------------------------------------------
# Reference + tests
# ---------------------------------------------------------------------------
def _swiglu_ref(x: jax.Array) -> jax.Array:
    a, g = jnp.split(x, 2, axis=-1)
    return jax.nn.silu(g) * a


if __name__ == "__main__":
    key = jax.random.PRNGKey(0)
    k1, k2, k3 = jax.random.split(key, 3)

    # 1) small shape consistent with the module (hidden=128 -> d=64, fallback path)
    x1 = jax.random.normal(k1, (2, 8, 128), dtype=jnp.float32)
    out1 = jax.block_until_ready(swiglu(x1))
    ref1 = _swiglu_ref(x1)
    assert out1.shape == ref1.shape == (2, 8, 64)
    assert jnp.allclose(out1, ref1, atol=1e-5, rtol=1e-5)

    # 2) lane-aligned hidden, ragged row count (split fast path, >=2 row blocks,
    #    partial last block masking)
    x2 = jax.random.normal(k2, (3, 6, 512), dtype=jnp.float32)
    out2 = jax.block_until_ready(swiglu(x2))
    ref2 = _swiglu_ref(x2)
    assert out2.shape == ref2.shape == (3, 6, 256)
    assert jnp.allclose(out2, ref2, atol=1e-5, rtol=1e-5)

    # 3) bf16 input on the split path (f32 math, EUP approx reciprocal, bf16 out)
    x3 = jax.random.normal(k3, (2, 8, 256), dtype=jnp.float32).astype(jnp.bfloat16)
    out3 = jax.block_until_ready(swiglu(x3))
    ref3 = _swiglu_ref(x3.astype(jnp.float32)).astype(jnp.bfloat16)
    assert out3.shape == ref3.shape == (2, 8, 128)
    assert jnp.allclose(out3.astype(jnp.float32), ref3.astype(jnp.float32),
                        atol=2e-2, rtol=2e-2)

    print("KERNEL_OK")
</pallas_src>

<mosaic_0001>
module attributes {stable_mosaic.version = 11 : i64} {
  func.func @_swiglu_concat_kernel(%arg0: i32, %arg1: memref<8x128xf32, #tpu.memory_space<vmem>>, %arg2: memref<8x64xf32, #tpu.memory_space<vmem>>) attributes {dimension_semantics = [#tpu.dimension_semantics<parallel>], iteration_bounds = array<i64: 2>, scalar_prefetch = 0 : i64, scratch_operands = 0 : i64, tpu.core_type = #tpu.core_type<tc>, window_params = [{transform_indices = @transform_0, window_bounds = array<i64: 8, 128>}, {transform_indices = @transform_1, window_bounds = array<i64: 8, 64>}]} {
    %c0 = arith.constant 0 : index
    %c0_0 = arith.constant 0 : index
    %0 = vector.load %arg1[%c0, %c0_0] : memref<8x128xf32, #tpu.memory_space<vmem>>, vector<8x128xf32>
    %1 = vector.extract_strided_slice %0 {offsets = [0, 0], sizes = [8, 64], strides = [1, 1]} : vector<8x128xf32> to vector<8x64xf32>
    %2 = vector.extract_strided_slice %0 {offsets = [0, 64], sizes = [8, 64], strides = [1, 1]} : vector<8x128xf32> to vector<8x64xf32>
    %3 = arith.negf %2 : vector<8x64xf32>
    %4 = math.exp %3 : vector<8x64xf32>
    %cst = arith.constant 1.000000e+00 : f32
    %5 = vector.broadcast %cst : f32 to vector<8x64xf32>
    %6 = arith.addf %5, %4 : vector<8x64xf32>
    %7 = arith.divf %5, %6 : vector<8x64xf32>
    %8 = arith.mulf %2, %7 : vector<8x64xf32>
    %9 = arith.mulf %8, %1 : vector<8x64xf32>
    %c0_1 = arith.constant 0 : index
    %c0_2 = arith.constant 0 : index
    %10 = vector.load %arg2[%c0_1, %c0_2] : memref<8x64xf32, #tpu.memory_space<vmem>>, vector<8x64xf32>
    tpu.vector_store %arg2[%c0_1, %c0_2], %9 {strides = array<i32>} : memref<8x64xf32, #tpu.memory_space<vmem>>, vector<8x64xf32>,
    return
  }
  func.func @transform_0(%arg0: i32) -> (i32, i32) {
    %c0_i32 = arith.constant 0 : i32
    %c0_i32_0 = arith.constant 0 : i32
    return %arg0, %c0_i32 : i32, i32
  }
  func.func @transform_1(%arg0: i32) -> (i32, i32) {
    %c0_i32 = arith.constant 0 : i32
    %c0_i32_0 = arith.constant 0 : i32
    return %arg0, %c0_i32 : i32, i32
  }
}

</mosaic_0001>

<bundles_post_ra>
// kernel: tpu_custom_call.1
= control target key start
LH: loop header
LB: loop body
LE: loop exit
PB: predicated region body
PF: predicated region fallthrough
CT: control target
= control target key end

     0   :  { %6 = vsyncpa [#allocation3], 0  ;;  %s571_s0 = inlined_call_operand.hbm [shape: f32[16,128], index: 0, kind: input, shape index: {}]   ;;  %s572_s1 = inlined_call_operand.hbm [shape: f32[16,64], index: 1, kind: output, shape index: {}]  }
   0x1   :  { %8 = vsyncpa [#allocation3 + $0x1], 0 }
   0x2   :  { %9 = vsyncpa [#allocation4], 0 }
   0x3   :  { %11 = vsyncpa [#allocation4 + $0x1], 0  ;;  %s410_s6 = smov 0   ;;  %s412_s7 = smov 0  }
   0x4   :  { %s414_s8 = smov 0   ;;  %s416_s9 = smov 0  }
   0x5 LB: > { %s431_s10 = sadd.s32 4294967295, %s395_s9   ;;  %s235_s11 = sadd.s32 4294967294, %s395_s9   ;;  %s395_s9 = sphi %s416_s9, %s587_s9   ;;  %s391_s8 = sphi %s414_s8, %s586_s8   ;;  %s387_s7 = sphi %s412_s7, %s585_s7   ;;  %s383_s6 = sphi %s410_s6, %s584_s6  }
   0x6   : > { %s435_s12 = sadd.s32 1, %s395_s9   ;;  %s24_s13 = sadd.s32 1, %s391_s8 }
   0x7   : > { %s21_s14 = ssub.s32 %s395_s9, %s435_s12  ;;  %p31_p0 = scmp.ne.s32.totalorder %s391_s8, %s387_s7 }
   0x8   : > { %p22_p1 = scmp.eq.s32.totalorder %s21_s14, 0  ;;  %p32_p2 = scmp.eq.s32.totalorder %s395_s9, 0 }
   0x9   : > { %p37_p3 = scmp.ne.s32.totalorder %s387_s7, %s383_s6  ;;  %p38_p4 = scmp.eq.s32.totalorder %s431_s10, 0 }
   0xa   : > { %s447_s15 = scalar_select %p22_p1, %s391_s8, %s24_s13  }
   0xb   : > { %p449_p5 = por %p32_p2, %p31_p0  ;;  %p453_p6 = por %p38_p4, %p37_p3 }
   0xc   : > { %p61_p7 = scmp.eq.s32.totalorder %s431_s10, 1  ;;  %p67_p8 = scmp.eq.s32.totalorder %s235_s11, 1 }
   0xd   : > { %p260_p10 = scmp.lt.s32.totalorder %s395_s9, 2  ;;  %s87_s20 = sand.u32 1, %s391_s8  }
   0xe   : > { %p460_p11 = por %p61_p7, %p31_p0  ;;  %p464_p12 = por %p67_p8, %p37_p3 }
   0xf   : > { %s239_s21 = sshll.u32 %s395_s9, 7  ;;  %s238_s22 = sshll.u32 %s87_s20, 3 }
  0x10   : > { %s576_s18 = scalar_select %p460_p11, 1, 0 }
  0x11   : > { %s577_s19 = scalar_select %p464_p12, 1, 0 }
  0x12   : > { %s473_s25 = scalar_lea.hbm %s571_s0, %s239_s21  ;;  %s91_s26 = scalar_lea.vmem [#allocation2], %s238_s22 }
  0x13   : > { %s98_s27 = sshll.u32 %s91_s26, 4  ;;  %p477_p13 = pnand %p260_p10, %p449_p5  ;;  %s481_s27 = int_to_ptr.vmem [resolvable:$true] %s98_s27 }
  0x14   : > { %s88_s29 = scalar_lea.sflag [#allocation3], %s87_s20  ;;  %s299_s30 = scalar_lea.hbm %s473_s25, 128 }
  0x15   : > { %p300_p2 = scmp.ne.s32.totalorder %s473_s25, %s299_s30  ;;  %p301_p3 = pneg %p477_p13 }
  0x16   : > { %s304_s4 = scalar_lea.hbm %s571_s0, 256  ;;  %p305_p5 = scmp.lt.u32.totalorder %s473_s25, %s571_s0 }
  0x17   : > { %p302_p4 = pnand %p301_p3, %p300_p2  ;;  %p306_p8 = scmp.lt.u32.totalorder %s304_s4, %s299_s30 }
  0x18   : > { %p308_p9 = scmp.lt.u32.totalorder %s299_s30, %s473_s25 }
  0x19   : > { %p303_p7 = pneg %p302_p4  ;;  %p307_p10 = por %p306_p8, %p305_p5 }
  0x1b   : > { %p309_p0 = por %p308_p9, %p307_p10 }
  0x1d   : > { %p310_p1 = pnand %p309_p0, %p303_p7 }
  0x1f   : > { %313 = shalt.err (!%p310_p1)
}
  0x20   : > { %s314_s13 = scalar_lea.vmem %s481_s27, 128  ;;  %s397_s14 = smov [#allocation2]  }
  0x21   : > { %p315_p2 = scmp.ne.s32.totalorder %s481_s27, %s314_s13  ;;  %s319_s16 = sshll.u32 %s397_s14, 4  ;;  %s320_s16 = int_to_ptr.vmem [resolvable:$false] %s319_s16 }
  0x22   : > { %s321_s20 = scalar_lea.vmem %s320_s16, 256  ;;  %p322_p11 = scmp.lt.s32.totalorder %s481_s27, %s320_s16 }
  0x23   : > { %p317_p4 = pnand %p315_p2, %p301_p3  ;;  %p323_p5 = scmp.lt.s32.totalorder %s321_s20, %s314_s13 }
  0x25   : > { %p318_p12 = pneg %p317_p4  ;;  %p324_p8 = por %p323_p5, %p322_p11 }
  0x27   : > { %p325_p9 = pnand %p324_p8, %p318_p12 }
  0x29   : > { %328 = shalt.err (!%p325_p9)
}
  0x2a   : > { %255 = dma.hbm_to_vmem [thread:$0]  (!%p477_p13), %s473_s25, 128, %s481_s27, %s88_s29  }
  0x2b   : > { %p579_p0 = scmp.lt.s32.totalorder %s395_s9, 3  ;;  %p580_p1 = scmp.ge.s32.totalorder %s395_s9, 1 }
  0x2d   : > { %p104_p3 = pnand %p580_p1, %p579_p0 }
  0x2e   : > { %s515_s21 = sand.u32 (!%p104_p3), 1, %s387_s7  }
  0x2f   : > { %107 = sbr.rel (%p104_p3) target bundleno = 302 (0x12e), region = 24  ;;  %s241_s22 = sshll.u32 (!%p104_p3), %s515_s21, 3 }
  0x30   : > { %s110_s23 = scalar_lea.sflag (!%p104_p3), [#allocation3], %s515_s21  ;;  %s113_s24 = scalar_lea.vmem (!%p104_p3), [#allocation2], %s241_s22 }
  0x36   : > { %374 = dma.done.wait (%p453_p6), %s110_s23, 128  }
  0x37   : > { %376 = vsyncadd (%p453_p6), %s110_s23, 4294967168  ;;  %v132_v0 = vld [vmem:[%s113_s24] sm:$0xff]  ;;  %s398_s25 = smov 64   ;;  %s245_s26 = sshll.u32 %s431_s10, 7  ;;  %vm149_vm0 = vcmask 523264  }
  0x38   : > { %141 = vrot.lane.b32.xlu0 %v132_v0, %s398_s25  ;;  %v243_v1 = vmul.f32 -1.442695, %v132_v0  ;;  %s131_s27 = scalar_lea.vmem [#allocation5], %s241_s22  ;;  %s527_s30 = scalar_lea.hbm %s572_s1, %s245_s26 }
  0x39   : > { %s165_s17 = sshll.u32 %s131_s27, 4  ;;  %s152_s2 = scalar_lea.sflag [#allocation4], %s515_s21  ;;  %s529_s17 = int_to_ptr.vmem [resolvable:$true] %s165_s17 }
  0x3a   : > { %295 = vpow2.f32 %v243_v1  ;;  %s329_s3 = scalar_lea.vmem %s529_s17, 128  ;;  %p581_p11 = scmp.ne.s32.totalorder %s576_s18, 0 }
  0x3b   : > { %p330_p6 = scmp.ne.s32.totalorder %s529_s17, %s329_s3  ;;  %s399_s10 = smov [#allocation5]  }
  0x3c   : > { %s333_s4 = sshll.u32 %s399_s10, 4  ;;  %s334_s4 = int_to_ptr.vmem [resolvable:$false] %s333_s4 }
  0x3d   : > { %p331_p12 = pnand %p330_p6, %p581_p11  ;;  %s335_s5 = scalar_lea.vmem %s334_s4, 256 }
  0x3e   : > { %p336_p7 = scmp.lt.s32.totalorder %s529_s17, %s334_s4  ;;  %p337_p10 = scmp.lt.s32.totalorder %s335_s5, %s329_s3 }
  0x3f   : > { %p332_p13 = pneg %p331_p12 }
  0x40   : > { %p338_p2 = por %p337_p10, %p336_p7 }
  0x42   : > { %p339_p4 = pnand %p338_p2, %p332_p13 }
  0x44   : > { %v296_v2 = vpop.eup %295 }
  0x45   : > { %v136_v3 = vadd.f32 1.0, %v296_v2 }
  0x47   : > { %297 = vrcp.f32 %v136_v3 }
  0x51   : > { %v298_v4 = vpop.eup %297 }
  0x52   : > { %v139_v5 = vmul.f32 %v298_v4, %v132_v0 }
  0xaa   : > { %v142_v6 = vpop.permute.xlu0 %141 }
  0xab   : > { %v144_v7 = vmul.f32 %v142_v6, %v139_v5 }
  0xad   : > { %146 = vrot.lane.b32.xlu0 %v144_v7, %s398_s25 }
 0x11f   : > { %v147_v8 = vpop.permute.xlu0 %146 }
 0x120   : > { %150 = vst.msk [vmem:[%s131_s27] sm:$0xff] %vm149_vm0, %v147_v8 }
 0x121   : > { %342 = shalt.err (!%p339_p4)
}
 0x122   : > { %s343_s11 = scalar_lea.hbm %s527_s30, 128  ;;  %s347_s16 = scalar_lea.hbm %s572_s1, 256 }
 0x123   : > { %p344_p5 = scmp.ne.s32.totalorder %s527_s30, %s343_s11  ;;  %p348_p0 = scmp.lt.u32.totalorder %s527_s30, %s572_s1 }
 0x124   : > { %p349_p1 = scmp.lt.u32.totalorder %s347_s16, %s343_s11  ;;  %p351_p6 = scmp.lt.u32.totalorder %s343_s11, %s527_s30 }
 0x125   : > { %p345_p8 = pnand %p344_p5, %p581_p11 }
 0x126   : > { %p350_p3 = por %p349_p1, %p348_p0 }
 0x127   : > { %p346_p9 = pneg %p345_p8 }
 0x128   : > { %p352_p12 = por %p351_p6, %p350_p3 }
 0x12a   : > { %p353_p13 = pnand %p352_p12, %p346_p9 }
 0x12c   : > { %356 = shalt.err (!%p353_p13)
}
 0x12d   : > { %250 = dma.vmem_to_hbm [thread:$0]  (%p581_p11), %s529_s17, 128, %s527_s30, %s152_s2  }
 0x12e PF: > { %s177_s22 = sand.u32 1, %s383_s6   ;;  %p582_p7 = scmp.ne.s32.totalorder %s577_s19, 0 }
 0x12f   : > { %p583_p10 = scmp.ge.s32.totalorder %s395_s9, 2  ;;  %s178_s23 = scalar_lea.sflag [#allocation4], %s177_s22 }
 0x131   : > { %p257_p2 = pnand %p583_p10, %p582_p7 }
 0x133   : > { %378 = dma.done.wait (!%p257_p2), %s178_s23, 128  }
 0x134   : > { %380 = vsyncadd (!%p257_p2), %s178_s23, 4294967168  ;;  %p14_p4 = scmp.ge.s32.totalorder %s435_s12, 4   ;;  %s584_s6 = smov %s387_s7 }
 0x135   : > { %s585_s7 = smov %s391_s8  ;;  %s586_s8 = smov %s447_s15 }
 0x136   : > { %s587_s9 = smov %s435_s12  ;;  %16 = sbr.rel (!%p14_p4) target bundleno = 5 (0x5), region = 69 }
 0x13d   :  { %183 = vsyncpa [#allocation3], 1 }
 0x13e   :  { %185 = vsyncpa [#allocation3 + $0x1], 1 }
 0x13f   :  { %186 = vsyncpa [#allocation4], 1 }
 0x140   :  { %188 = vsyncpa [#allocation4 + $0x1], 1 }

</bundles_post_ra>
